<compile_context>
chip_gen: v7x
topology: tpu7x:2x2x1
jax: 0.10.0
libtpu: 0.0.40
codegen_flags: <defaults>
</compile_context>

<pallas_src>
import jax
import jax.numpy as jnp
from jax.experimental import pallas as pl
from jax.experimental.pallas import tpu as pltpu


_LANE = 128
_SUBLANE = 8   # float32 sublane count


def _round_up(v, m):
    return ((v + m - 1) // m) * m


def _linear_kernel(x_ref, w_ref, b_ref, o_ref):
    # x_ref: (TB, F), w_ref: (F, TN), b_ref: (1, TN), o_ref: (TB, TN)
    acc = jnp.dot(x_ref[...], w_ref[...], preferred_element_type=jnp.float32)
    o_ref[...] = (acc + b_ref[...]).astype(o_ref.dtype)


def prepare_classifier_params(weight, bias):
    """One-time (init-time) parameter prep.

    weight: (concept_size, feat_len) PyTorch Linear layout
    bias:   (concept_size,)
    Returns (w_t, bias2d) with w_t = (feat_len, concept_size), bias2d = (1, concept_size).
    Doing the transpose/reshape here (outside the per-step forward) avoids paying these
    XLA ops on every call.
    """
    w_t = jnp.asarray(weight).T
    bias2d = jnp.asarray(bias).reshape(1, -1)
    return w_t, bias2d


def _vmem_capacity_bytes():
    try:
        info = pltpu.get_tpu_info()
        cap = getattr(info, "vmem_capacity_bytes", None)
        if cap:
            return int(cap)
    except Exception:
        pass
    return 64 << 20   # conservative fallback (v7x per-TensorCore)


def semantic_feature_classifier(x, w_t, bias2d, *, tile_b=None, tile_n=None,
                                force_pallas=False):
    """out = x @ w_t + bias  (== nn.Linear(feat_len, concept_size).forward).

    x:      (B, F) float32
    w_t:    (F, C) float32   (pre-transposed weight from prepare_classifier_params)
    bias2d: (1, C) float32
    returns (B, C) float32
    """
    B, F = x.shape
    F2, C = w_t.shape
    assert F == F2, "feat_len mismatch"
    itemsize = jnp.dtype(x.dtype).itemsize
    # TODO(synk): tiling constants assume float32 (sublane 8); revisit for bf16/int8 inputs.

    # --- dispatch: tiny shapes (the real model: F=32, C=16, small B) are launch-overhead
    #     bound in a standalone pallas_call; let XLA fuse them into the producer of x.
    bytes_moved = (B * F + F * C + B * C + C) * itemsize
    if not force_pallas and bytes_moved < (1 << 20):
        return x @ w_t + bias2d

    vmem_cap = _vmem_capacity_bytes()
    weight_budget = vmem_cap // 4   # room left for pipelined x/out tiles

    # --- N (concept) tiling: keep the whole (F, C) weight resident when it fits,
    #     otherwise tile C in MXU-friendly multiples of 256.
    if tile_n is None:
        if C <= 256 or F * C * itemsize <= weight_budget:
            tile_n = C
        else:
            tile_n = 256
    tile_n = min(tile_n, C)
    if tile_n != C:
        tile_n = max(_LANE, _round_up(tile_n, _LANE))

    # --- batch tiling: ~1 MiB of x+out traffic per step (amortize ~0.35us/step),
    #     cap 2048 rows, multiple of 8, keep >= 2 grid steps when B allows (v7x 2 TCs),
    #     and shrink until resident weight + double-buffered tiles fit the VMEM budget.
    def _vmem_needed(tb):
        return itemsize * (F * tile_n + tile_n + 2 * tb * F + 2 * tb * tile_n)

    if tile_b is None:
        per_row = (F + tile_n) * itemsize
        tile_b = _round_up(max(1, (1 << 20) // max(per_row, 1)), _SUBLANE)
        tile_b = max(_SUBLANE, min(tile_b, 2048))
        tile_b = min(tile_b, _round_up(B, _SUBLANE))
        if B >= 2 * _SUBLANE and pl.cdiv(B, tile_b) < 2:
            tile_b = _round_up(pl.cdiv(B, 2), _SUBLANE)
        while tile_b > _SUBLANE and _vmem_needed(tile_b) > (3 * vmem_cap) // 4:
            tile_b = max(_SUBLANE, _round_up(tile_b // 2, _SUBLANE))
    tile_b = max(_SUBLANE, _round_up(tile_b, _SUBLANE))

    grid = (pl.cdiv(B, tile_b), pl.cdiv(C, tile_n))
    n_tiles_n = grid[1]

    # Never set the scoped VMEM limit below the platform default; clamp to 3/4 physical.
    vmem_limit = int(min(max(2 * _vmem_needed(tile_b), 32 << 20), (3 * vmem_cap) // 4))

    cost = pl.CostEstimate(
        flops=2 * B * F * C,
        transcendentals=0,
        bytes_accessed=(B * F * n_tiles_n + F * C + B * C + C) * itemsize,
    )

    return pl.pallas_call(
        _linear_kernel,
        out_shape=jax.ShapeDtypeStruct((B, C), x.dtype),
        grid=grid,
        in_specs=[
            pl.BlockSpec((tile_b, F), lambda i, j: (i, 0)),    # x batch tile
            pl.BlockSpec((F, tile_n), lambda i, j: (0, j)),    # weight (resident when tile_n == C)
            pl.BlockSpec((1, tile_n), lambda i, j: (0, j)),    # bias row
        ],
        out_specs=pl.BlockSpec((tile_b, tile_n), lambda i, j: (i, j)),
        compiler_params=pltpu.CompilerParams(
            dimension_semantics=("parallel", "parallel"),
            vmem_limit_bytes=vmem_limit,
        ),
        cost_estimate=cost,
    )(x, w_t, bias2d)


if __name__ == "__main__":
    # Small shapes consistent with the module: feat_len=32, concept_size=16, batch=8.
    batch, feat_len, concept_size = 8, 32, 16

    key = jax.random.PRNGKey(0)
    kx, kw, kb, kx2 = jax.random.split(key, 4)

    # Deterministic synthetic init (mimics nn.Linear uniform bound 1/sqrt(feat_len)).
    bound = 1.0 / jnp.sqrt(jnp.float32(feat_len))
    x = jax.random.normal(kx, (batch, feat_len), dtype=jnp.float32)
    weight = jax.random.uniform(kw, (concept_size, feat_len),
                                minval=-bound, maxval=bound, dtype=jnp.float32)
    bias = jax.random.uniform(kb, (concept_size,),
                              minval=-bound, maxval=bound, dtype=jnp.float32)

    w_t, bias2d = prepare_classifier_params(weight, bias)
    ref = x @ weight.T + bias

    # 1) Default dispatch: tiny shapes take the fused-XLA path.
    out_xla = jax.block_until_ready(semantic_feature_classifier(x, w_t, bias2d))
    assert out_xla.shape == (batch, concept_size)
    assert jnp.allclose(out_xla, ref, atol=1e-5, rtol=1e-5), "XLA path mismatch"

    # 2) Force the Pallas kernel at the same small shape (single, partially-masked block).
    out_pl = jax.block_until_ready(
        semantic_feature_classifier(x, w_t, bias2d, force_pallas=True))
    assert out_pl.shape == (batch, concept_size)
    assert jnp.allclose(out_pl, ref, atol=1e-5, rtol=1e-5), "Pallas path mismatch (small)"

    # 3) Medium batch, not a multiple of the tile: multi-step grid + masked last block.
    B2 = 1000
    x2 = jax.random.normal(kx2, (B2, feat_len), dtype=jnp.float32)
    ref2 = x2 @ weight.T + bias
    out2 = jax.block_until_ready(
        semantic_feature_classifier(x2, w_t, bias2d, tile_b=256, force_pallas=True))
    assert out2.shape == (B2, concept_size)
    assert jnp.allclose(out2, ref2, atol=1e-4, rtol=1e-4), "Pallas path mismatch (medium)"

    print("KERNEL_OK")
</pallas_src>

<mosaic_0001>
module attributes {stable_mosaic.version = 11 : i64} {
  func.func @_linear_kernel(%arg0: i32, %arg1: i32, %arg2: memref<8x32xf32, #tpu.memory_space<vmem>>, %arg3: memref<32x16xf32, #tpu.memory_space<vmem>>, %arg4: memref<1x16xf32, #tpu.memory_space<vmem>>, %arg5: memref<8x16xf32, #tpu.memory_space<vmem>>) attributes {dimension_semantics = [#tpu.dimension_semantics<parallel>, #tpu.dimension_semantics<parallel>], iteration_bounds = array<i64: 1, 1>, scalar_prefetch = 0 : i64, scratch_operands = 0 : i64, tpu.core_type = #tpu.core_type<tc>, window_params = [{transform_indices = @transform_0, window_bounds = array<i64: 8, 32>}, {transform_indices = @transform_1, window_bounds = array<i64: 32, 16>}, {transform_indices = @transform_2, window_bounds = array<i64: 1, 16>}, {transform_indices = @transform_3, window_bounds = array<i64: 8, 16>}]} {
    %c0 = arith.constant 0 : index
    %c0_0 = arith.constant 0 : index
    %0 = vector.load %arg2[%c0, %c0_0] : memref<8x32xf32, #tpu.memory_space<vmem>>, vector<8x32xf32>
    %c0_1 = arith.constant 0 : index
    %c0_2 = arith.constant 0 : index
    %1 = vector.load %arg3[%c0_1, %c0_2] : memref<32x16xf32, #tpu.memory_space<vmem>>, vector<32x16xf32>
    %cst = arith.constant dense<0.000000e+00> : vector<8x16xf32>
    %2 = tpu.matmul %0, %1, %cst {dimension_numbers = #tpu.dot_dimension_numbers<[1], [0], [0], [1], [0, 0, 1, 1], [], []>} : vector<8x32xf32>, vector<32x16xf32>, vector<8x16xf32> -> vector<8x16xf32>
    %c0_3 = arith.constant 0 : index
    %c0_4 = arith.constant 0 : index
    %3 = vector.load %arg4[%c0_3, %c0_4] : memref<1x16xf32, #tpu.memory_space<vmem>>, vector<1x16xf32>
    %4 = vector.broadcast %3 : vector<1x16xf32> to vector<8x16xf32>
    %5 = arith.addf %2, %4 : vector<8x16xf32>
    %c0_5 = arith.constant 0 : index
    %c0_6 = arith.constant 0 : index
    %6 = vector.load %arg5[%c0_5, %c0_6] : memref<8x16xf32, #tpu.memory_space<vmem>>, vector<8x16xf32>
    tpu.vector_store %arg5[%c0_5, %c0_6], %5 {strides = array<i32>} : memref<8x16xf32, #tpu.memory_space<vmem>>, vector<8x16xf32>,
    return
  }
  func.func @transform_0(%arg0: i32, %arg1: i32) -> (i32, i32) {
    %c0_i32 = arith.constant 0 : i32
    %c0_i32_0 = arith.constant 0 : i32
    return %arg0, %c0_i32 : i32, i32
  }
  func.func @transform_1(%arg0: i32, %arg1: i32) -> (i32, i32) {
    %c0_i32 = arith.constant 0 : i32
    %c0_i32_0 = arith.constant 0 : i32
    return %c0_i32, %arg1 : i32, i32
  }
  func.func @transform_2(%arg0: i32, %arg1: i32) -> (i32, i32) {
    %c0_i32 = arith.constant 0 : i32
    %c0_i32_0 = arith.constant 0 : i32
    return %c0_i32, %arg1 : i32, i32
  }
  func.func @transform_3(%arg0: i32, %arg1: i32) -> (i32, i32) {
    %c0_i32 = arith.constant 0 : i32
    return %arg0, %arg1 : i32, i32
  }
}

</mosaic_0001>

<bundles_post_ra>
// kernel: tpu_custom_call.1
= control target key start
LH: loop header
LB: loop body
LE: loop exit
PB: predicated region body
PF: predicated region fallthrough
CT: control target
= control target key end

     0   :  { %v169_v3 = vmov 0.0|0.0   ;;  %vm170_vm0 = vmmov 0   ;;  %v171_v6 = vmov 0.0   ;;  %s223_s0 = inlined_call_operand.vmem [shape: f32[8,32], index: 0, kind: input, shape index: {}]   ;;  %s224_s1 = inlined_call_operand.vmem [shape: f32[32,16], index: 1, kind: input, shape index: {}]   ;;  %s225_s2 = inlined_call_operand.vmem [shape: f32[1,16], index: 2, kind: input, shape index: {}]   ;;  %s226_s3 = inlined_call_operand.hbm [shape: f32[8,16], index: 3, kind: output, shape index: {}]  }
   0x1   :  { %v16_v0 = vld [vmem:[%s224_s1] sm:$0xff]  ;;  %v17_v1 = vld [vmem:[%s224_s1 + $0x8] sm:$0xff]  ;;  %v18_v2 = vld [vmem:[%s224_s1 + $0x10] sm:$0xff]  ;;  %135 = vmatprep.subr.bf16.mxu0 %v169_v3  ;;  %132 = vmatprep.mubr.msk.f32.mxu0 %vm170_vm0, %v171_v6 }
   0x2   :  { %v136_v4 = vpack.c.bf16 %v17_v1, %v16_v0  ;;  %v19_v5 = vld [vmem:[%s224_s1 + $0x18] sm:$0xff] }
   0x3   :  { %8 = vsyncpa [#allocation3], 0  ;;  %v139_v7 = vpack.c.bf16 %v19_v5, %v18_v2  ;;  %v15_v8 = vld [vmem:[%s223_s0] sm:$0xff]  ;;  %vm27_vm1 = vcmask 261120   ;;  %s172_s24 = smov [#allocation2]   ;;  %vm101_vm2 = vcmask 130048  }
   0x4   :  { %137 = vmatpush3.bf16.msra.mxu0 %v136_v4  ;;  %v117_v9 = vld [vmem:[%s225_s2] ss:$0 sm:$0xff]  ;;  %s109_s1 = sshll.u32 %s172_s24, 4  ;;  %s110_s1 = int_to_ptr.vmem [resolvable:$true] %s109_s1 }
   0x5   :  { %138 = vmatprep.subr.bf16.mxu0 %v169_v3  ;;  %s145_s25 = scalar_lea.vmem %s110_s1, 128  ;;  %p150_p1 = scmp.lt.s32.totalorder %s110_s1, %s110_s1 }
   0x6   :  { %p146_p0 = scmp.ne.s32.totalorder %s110_s1, %s145_s25  ;;  %p151_p2 = scmp.lt.s32.totalorder %s145_s25, %s145_s25 }
   0x8   :  { %140 = vmatpush3.bf16.msra.mxu0 %v139_v7  ;;  %p152_p3 = por %p151_p2, %p150_p1 }
   0xa   :  { %p153_p4 = pnand %p152_p3, %p146_p0 }
   0xb   :  { %133 = vmatmul.mubr.msk.f32.vlgmr.msra.gmra.mrb[0].mxu0 %vm27_vm1, %v15_v8 }
  0xde   :  { %v97_v10 = vpop.f32.mrb[0].mxu0 }
  0xdf   :  { %v98_v11 = vadd.f32 %v117_v9, %v97_v10  ;;  %v134_v12 = vpop.f32.mrb[1].mxu0 }
  0xe1   :  { %102 = vst.msk [vmem:[#allocation2] sm:$0xff] %vm101_vm2, %v98_v11 }
  0xe2   :  { %156 = shalt.err (!%p153_p4)
}
  0xe3   :  { %s157_s27 = scalar_lea.hbm %s226_s3, 128 }
  0xe4   :  { %p158_p5 = scmp.ne.s32.totalorder %s226_s3, %s157_s27  ;;  %p161_p6 = scmp.lt.u32.totalorder %s157_s27, %s226_s3 }
  0xe6   :  { %p163_p7 = pnand %p161_p6, %p158_p5 }
  0xe8   :  { %166 = shalt.err (!%p163_p7)
}
  0xe9   :  { %112 = dma.vmem_to_hbm [thread:$0]  %s110_s1, 128, %s226_s3, [#allocation3]  }
  0xea   :  { %167 = dma.done.wait [#allocation3], 128  }
  0xeb   :  { %168 = vsyncadd [#allocation3], 4294967168 }
  0xec   :  { %116 = vsyncpa [#allocation3], 1 }

</bundles_post_ra>
